<compile_context>
chip_gen: v7x
topology: tpu7x:2x2x1
jax: 0.10.0
libtpu: 0.0.40
codegen_flags: <defaults>
</compile_context>

<pallas_src>
import functools

import jax
import jax.numpy as jnp
from jax.experimental import pallas as pl
from jax.experimental.pallas import tpu as pltpu

_LANE = 128
_SUBLANE = 8
_VMEM_LIMIT_BYTES = 48 * 1024 * 1024   # safe on v5e/v6e (128 MiB) and v7x (64 MiB per TC)
_VMEM_TILE_BUDGET = 36 * 1024 * 1024   # working-set budget used to pick the N tile


def _round_up(x, m):
    return (x + m - 1) // m * m


def _choose_tile_n(n, d_pad, c_pad, max_tile_n):
    # Resident: W (D_pad x C_pad) + a handful of per-feature vectors; per-row cost:
    # double-buffered x-tile row + out-tile row.
    resident = d_pad * c_pad * 4 + 6 * (d_pad + c_pad) * 4
    per_row = 2 * 2 * (d_pad + c_pad) * 4
    budget_rows = max((_VMEM_TILE_BUDGET - resident) // per_row, _SUBLANE)
    tile = min(budget_rows, 1024, max_tile_n, _round_up(n, _SUBLANE))
    return max(_SUBLANE, (tile // _SUBLANE) * _SUBLANE)


def _stats_kernel(x_ref, gamma_ref, beta_ref, scale_ref, shift_ref,
                  sum_ref, sq_ref, *, n_rows, eps):
    """Accumulate batch sum / sum-of-squares; finalize folded BN scale/shift."""
    i = pl.program_id(0)

    @pl.when(i == 0)
    def _():
        sum_ref[...] = jnp.zeros_like(sum_ref)
        sq_ref[...] = jnp.zeros_like(sq_ref)

    x = x_ref[...].astype(jnp.float32)          # padded rows are zero -> no contribution
    sum_ref[...] += jnp.sum(x, axis=0, keepdims=True)
    sq_ref[...] += jnp.sum(x * x, axis=0, keepdims=True)

    @pl.when(i == pl.num_programs(0) - 1)
    def _():
        inv_n = 1.0 / n_rows                    # divide by the TRUE global N (static)
        mean = sum_ref[...] * inv_n
        var = jnp.maximum(sq_ref[...] * inv_n - mean * mean, 0.0)
        scale = gamma_ref[...] * jax.lax.rsqrt(var + eps)   # EUP rsqrt
        scale_ref[...] = scale
        shift_ref[...] = beta_ref[...] - mean * scale


def _fwd_kernel(x_ref, scale_ref, shift_ref, w_ref, b_ref, o_ref):
    """y = relu(x * scale + shift);  o = y @ W + b   (single VPU pass + MXU matmul)."""
    x = x_ref[...].astype(jnp.float32)
    y = jnp.maximum(x * scale_ref[...] + shift_ref[...], 0.0)
    o_ref[...] = (jnp.dot(y, w_ref[...], preferred_element_type=jnp.float32)
                  + b_ref[...]).astype(o_ref.dtype)


def classifier_forward(x, gamma, beta, w, b, *, eps=1e-5, max_tile_n=1024):
    """Classifier forward. x: (N, D); w: (C, D) PyTorch layout; b: (C,); gamma/beta: (D,)."""
    n, d = x.shape
    c = w.shape[0]
    d_pad = _round_up(d, _LANE)
    c_pad = _round_up(c, _LANE)
    tile_n = _choose_tile_n(n, d_pad, c_pad, max_tile_n)
    n_pad = _round_up(n, tile_n)
    num_tiles = n_pad // tile_n

    f32 = jnp.float32
    # Zero-padding keeps stats exact (padded rows/cols contribute nothing) and padded
    # W rows/cols are zero so padded features never leak into the real outputs.
    x_p = jnp.zeros((n_pad, d_pad), f32).at[:n, :d].set(x.astype(f32))
    gamma_p = jnp.zeros((1, d_pad), f32).at[0, :d].set(gamma.astype(f32))
    beta_p = jnp.zeros((1, d_pad), f32).at[0, :d].set(beta.astype(f32))
    w_p = jnp.zeros((d_pad, c_pad), f32).at[:d, :c].set(w.astype(f32).T)
    b_p = jnp.zeros((1, c_pad), f32).at[0, :c].set(b.astype(f32))

    vec_d_spec = pl.BlockSpec((1, d_pad), lambda i: (0, 0))      # resident across tiles

    # Phase 1: batch statistics -> folded per-feature scale / shift.
    scale, shift = pl.pallas_call(
        functools.partial(_stats_kernel, n_rows=float(n), eps=float(eps)),
        out_shape=(jax.ShapeDtypeStruct((1, d_pad), f32),
                   jax.ShapeDtypeStruct((1, d_pad), f32)),
        grid=(num_tiles,),
        in_specs=[pl.BlockSpec((tile_n, d_pad), lambda i: (i, 0)),
                  vec_d_spec, vec_d_spec],
        out_specs=(vec_d_spec, vec_d_spec),
        scratch_shapes=[pltpu.VMEM((1, d_pad), f32),
                        pltpu.VMEM((1, d_pad), f32)],
        compiler_params=pltpu.CompilerParams(
            dimension_semantics=("arbitrary",),
            vmem_limit_bytes=_VMEM_LIMIT_BYTES),
    )(x_p, gamma_p, beta_p)

    # Phase 2: normalize + ReLU + matmul; batch axis is "parallel" (megacore-splittable).
    out_p = pl.pallas_call(
        _fwd_kernel,
        out_shape=jax.ShapeDtypeStruct((n_pad, c_pad), f32),
        grid=(num_tiles,),
        in_specs=[pl.BlockSpec((tile_n, d_pad), lambda i: (i, 0)),
                  vec_d_spec, vec_d_spec,
                  pl.BlockSpec((d_pad, c_pad), lambda i: (0, 0)),   # W resident
                  pl.BlockSpec((1, c_pad), lambda i: (0, 0))],      # b resident
        out_specs=pl.BlockSpec((tile_n, c_pad), lambda i: (i, 0)),
        compiler_params=pltpu.CompilerParams(
            dimension_semantics=("parallel",),
            vmem_limit_bytes=_VMEM_LIMIT_BYTES),
    )(x_p, scale, shift, w_p, b_p)

    return out_p[:n, :c]


def reference_forward(x, gamma, beta, w, b, eps=1e-5):
    mean = jnp.mean(x, axis=0, keepdims=True)
    var = jnp.mean((x - mean) ** 2, axis=0, keepdims=True)
    xhat = (x - mean) / jnp.sqrt(var + eps)
    y = jnp.maximum(xhat * gamma[None, :] + beta[None, :], 0.0)
    return y @ w.T + b[None, :]


if __name__ == "__main__":
    key = jax.random.PRNGKey(0)
    N, D, C = 40, 32, 16  # batch, input_dim, n_classes

    k_x, k_w = jax.random.split(key)
    x = jax.random.normal(k_x, (N, D), dtype=jnp.float32)

    # Parameter init mirroring the PyTorch module:
    #   BatchNorm1d: weight = 1, bias = 0  (init_weights)
    #   Linear: default kaiming-uniform weight, bias = 0 (init_weights)
    gamma = jnp.ones((D,), dtype=jnp.float32)
    beta = jnp.zeros((D,), dtype=jnp.float32)
    bound = jnp.sqrt(jnp.float32(3.0)) / jnp.sqrt(jnp.float32(D))
    w = jax.random.uniform(k_w, (C, D), dtype=jnp.float32, minval=-bound, maxval=bound)
    b = jnp.zeros((C,), dtype=jnp.float32)

    ref = reference_forward(x, gamma, beta, w, b)

    # max_tile_n=16 forces a multi-tile grid (3 tiles + padded rows) to exercise the
    # tiled stats-accumulation / zero-padding path even at toy sizes.
    out_multi = jax.block_until_ready(classifier_forward(x, gamma, beta, w, b, max_tile_n=16))
    assert out_multi.shape == (N, C)
    assert jnp.allclose(out_multi, ref, atol=1e-4, rtol=1e-4), \
        float(jnp.max(jnp.abs(out_multi - ref)))

    # Default (single-tile) path.
    out_single = jax.block_until_ready(classifier_forward(x, gamma, beta, w, b))
    assert jnp.allclose(out_single, ref, atol=1e-4, rtol=1e-4), \
        float(jnp.max(jnp.abs(out_single - ref)))

    print("KERNEL_OK")
</pallas_src>

<mosaic_0001>
module attributes {stable_mosaic.version = 11 : i64} {
  func.func @_stats_kernel(%arg0: i32, %arg1: memref<16x128xf32, #tpu.memory_space<vmem>>, %arg2: memref<1x128xf32, #tpu.memory_space<vmem>>, %arg3: memref<1x128xf32, #tpu.memory_space<vmem>>, %arg4: memref<1x128xf32, #tpu.memory_space<vmem>>, %arg5: memref<1x128xf32, #tpu.memory_space<vmem>>, %arg6: memref<1x128xf32, #tpu.memory_space<vmem>>, %arg7: memref<1x128xf32, #tpu.memory_space<vmem>>) attributes {dimension_semantics = [#tpu.dimension_semantics<arbitrary>], iteration_bounds = array<i64: 3>, scalar_prefetch = 0 : i64, scratch_operands = 2 : i64, tpu.core_type = #tpu.core_type<tc>, window_params = [{transform_indices = @transform_0, window_bounds = array<i64: 16, 128>}, {pipeline_mode = #tpu.pipeline_mode<synchronous>, transform_indices = @transform_1, window_bounds = array<i64: 1, 128>}, {pipeline_mode = #tpu.pipeline_mode<synchronous>, transform_indices = @transform_2, window_bounds = array<i64: 1, 128>}, {pipeline_mode = #tpu.pipeline_mode<synchronous>, transform_indices = @transform_3, window_bounds = array<i64: 1, 128>}, {pipeline_mode = #tpu.pipeline_mode<synchronous>, transform_indices = @transform_4, window_bounds = array<i64: 1, 128>}]} {
    %c0_i32 = arith.constant 0 : i32
    %0 = arith.cmpi eq, %arg0, %c0_i32 : i32
    %1 = arith.extui %0 : i1 to i32
    %c0_i32_0 = arith.constant 0 : i32
    %2 = arith.cmpi ne, %1, %c0_i32_0 : i32
    scf.if %2 {
      %cst_12 = arith.constant 0.000000e+00 : f32
      %18 = vector.broadcast %cst_12 : f32 to vector<1x128xf32>
      %c0_13 = arith.constant 0 : index
      %c0_14 = arith.constant 0 : index
      %19 = vector.load %arg6[%c0_13, %c0_14] : memref<1x128xf32, #tpu.memory_space<vmem>>, vector<1x128xf32>
      tpu.vector_store %arg6[%c0_13, %c0_14], %18 {strides = array<i32>} : memref<1x128xf32, #tpu.memory_space<vmem>>, vector<1x128xf32>,
      %cst_15 = arith.constant 0.000000e+00 : f32
      %20 = vector.broadcast %cst_15 : f32 to vector<1x128xf32>
      %c0_16 = arith.constant 0 : index
      %c0_17 = arith.constant 0 : index
      %21 = vector.load %arg7[%c0_16, %c0_17] : memref<1x128xf32, #tpu.memory_space<vmem>>, vector<1x128xf32>
      tpu.vector_store %arg7[%c0_16, %c0_17], %20 {strides = array<i32>} : memref<1x128xf32, #tpu.memory_space<vmem>>, vector<1x128xf32>,
    } else {
    }
    %c0 = arith.constant 0 : index
    %c0_1 = arith.constant 0 : index
    %3 = vector.load %arg1[%c0, %c0_1] : memref<16x128xf32, #tpu.memory_space<vmem>>, vector<16x128xf32>
    %c0_2 = arith.constant 0 : index
    %c0_3 = arith.constant 0 : index
    %4 = vector.load %arg6[%c0_2, %c0_3] : memref<1x128xf32, #tpu.memory_space<vmem>>, vector<1x128xf32>
    %cst = arith.constant dense<0.000000e+00> : vector<128xf32>
    %5 = vector.multi_reduction <add>, %3, %cst [0] : vector<16x128xf32> to vector<128xf32>
    %6 = vector.shape_cast %5 : vector<128xf32> to vector<1x128xf32>
    %7 = arith.addf %4, %6 : vector<1x128xf32>
    %c0_4 = arith.constant 0 : index
    %c0_5 = arith.constant 0 : index
    %8 = vector.load %arg6[%c0_4, %c0_5] : memref<1x128xf32, #tpu.memory_space<vmem>>, vector<1x128xf32>
    tpu.vector_store %arg6[%c0_4, %c0_5], %7 {strides = array<i32>} : memref<1x128xf32, #tpu.memory_space<vmem>>, vector<1x128xf32>,
    %c0_6 = arith.constant 0 : index
    %c0_7 = arith.constant 0 : index
    %9 = vector.load %arg7[%c0_6, %c0_7] : memref<1x128xf32, #tpu.memory_space<vmem>>, vector<1x128xf32>
    %10 = arith.mulf %3, %3 : vector<16x128xf32>
    %cst_8 = arith.constant dense<0.000000e+00> : vector<128xf32>
    %11 = vector.multi_reduction <add>, %10, %cst_8 [0] : vector<16x128xf32> to vector<128xf32>
    %12 = vector.shape_cast %11 : vector<128xf32> to vector<1x128xf32>
    %13 = arith.addf %9, %12 : vector<1x128xf32>
    %c0_9 = arith.constant 0 : index
    %c0_10 = arith.constant 0 : index
    %14 = vector.load %arg7[%c0_9, %c0_10] : memref<1x128xf32, #tpu.memory_space<vmem>>, vector<1x128xf32>
    tpu.vector_store %arg7[%c0_9, %c0_10], %13 {strides = array<i32>} : memref<1x128xf32, #tpu.memory_space<vmem>>, vector<1x128xf32>,
    %c2_i32 = arith.constant 2 : i32
    %15 = arith.cmpi eq, %arg0, %c2_i32 : i32
    %16 = arith.extui %15 : i1 to i32
    %c0_i32_11 = arith.constant 0 : i32
    %17 = arith.cmpi ne, %16, %c0_i32_11 : i32
    scf.if %17 {
      %c0_12 = arith.constant 0 : index
      %c0_13 = arith.constant 0 : index
      %18 = vector.load %arg6[%c0_12, %c0_13] : memref<1x128xf32, #tpu.memory_space<vmem>>, vector<1x128xf32>
      %cst_14 = arith.constant 2.500000e-02 : f32
      %19 = vector.broadcast %cst_14 : f32 to vector<1x128xf32>
      %20 = arith.mulf %18, %19 : vector<1x128xf32>
      %c0_15 = arith.constant 0 : index
      %c0_16 = arith.constant 0 : index
      %21 = vector.load %arg7[%c0_15, %c0_16] : memref<1x128xf32, #tpu.memory_space<vmem>>, vector<1x128xf32>
      %cst_17 = arith.constant 2.500000e-02 : f32
      %22 = vector.broadcast %cst_17 : f32 to vector<1x128xf32>
      %23 = arith.mulf %21, %22 : vector<1x128xf32>
      %24 = arith.mulf %20, %20 : vector<1x128xf32>
      %25 = arith.subf %23, %24 : vector<1x128xf32>
      %cst_18 = arith.constant 0.000000e+00 : f32
      %26 = vector.broadcast %cst_18 : f32 to vector<1x128xf32>
      %27 = arith.maximumf %25, %26 : vector<1x128xf32>
      %c0_19 = arith.constant 0 : index
      %c0_20 = arith.constant 0 : index
      %28 = vector.load %arg2[%c0_19, %c0_20] : memref<1x128xf32, #tpu.memory_space<vmem>>, vector<1x128xf32>
      %cst_21 = arith.constant 9.99999974E-6 : f32
      %29 = vector.broadcast %cst_21 : f32 to vector<1x128xf32>
      %30 = arith.addf %27, %29 : vector<1x128xf32>
      %31 = math.rsqrt %30 : vector<1x128xf32>
      %32 = arith.mulf %28, %31 : vector<1x128xf32>
      %c0_22 = arith.constant 0 : index
      %c0_23 = arith.constant 0 : index
      %33 = vector.load %arg4[%c0_22, %c0_23] : memref<1x128xf32, #tpu.memory_space<vmem>>, vector<1x128xf32>
      tpu.vector_store %arg4[%c0_22, %c0_23], %32 {strides = array<i32>} : memref<1x128xf32, #tpu.memory_space<vmem>>, vector<1x128xf32>,
      %c0_24 = arith.constant 0 : index
      %c0_25 = arith.constant 0 : index
      %34 = vector.load %arg3[%c0_24, %c0_25] : memref<1x128xf32, #tpu.memory_space<vmem>>, vector<1x128xf32>
      %35 = arith.mulf %20, %32 : vector<1x128xf32>
      %36 = arith.subf %34, %35 : vector<1x128xf32>
      %c0_26 = arith.constant 0 : index
      %c0_27 = arith.constant 0 : index
      %37 = vector.load %arg5[%c0_26, %c0_27] : memref<1x128xf32, #tpu.memory_space<vmem>>, vector<1x128xf32>
      tpu.vector_store %arg5[%c0_26, %c0_27], %36 {strides = array<i32>} : memref<1x128xf32, #tpu.memory_space<vmem>>, vector<1x128xf32>,
    } else {
    }
    return
  }
  func.func @transform_0(%arg0: i32) -> (i32, i32) {
    %c0_i32 = arith.constant 0 : i32
    %c0_i32_0 = arith.constant 0 : i32
    return %arg0, %c0_i32 : i32, i32
  }
  func.func @transform_1(%arg0: i32) -> (i32, i32) {
    %c0_i32 = arith.constant 0 : i32
    %c0_i32_0 = arith.constant 0 : i32
    %c0_i32_1 = arith.constant 0 : i32
    return %c0_i32, %c0_i32_0 : i32, i32
  }
  func.func @transform_2(%arg0: i32) -> (i32, i32) {
    %c0_i32 = arith.constant 0 : i32
    %c0_i32_0 = arith.constant 0 : i32
    %c0_i32_1 = arith.constant 0 : i32
    return %c0_i32, %c0_i32_0 : i32, i32
  }
  func.func @transform_3(%arg0: i32) -> (i32, i32) {
    %c0_i32 = arith.constant 0 : i32
    %c0_i32_0 = arith.constant 0 : i32
    %c0_i32_1 = arith.constant 0 : i32
    return %c0_i32, %c0_i32_0 : i32, i32
  }
  func.func @transform_4(%arg0: i32) -> (i32, i32) {
    %c0_i32 = arith.constant 0 : i32
    %c0_i32_0 = arith.constant 0 : i32
    %c0_i32_1 = arith.constant 0 : i32
    return %c0_i32, %c0_i32_0 : i32, i32
  }
}

</mosaic_0001>

<bundles_post_ra>
// kernel: tpu_custom_call.1
= control target key start
LH: loop header
LB: loop body
LE: loop exit
PB: predicated region body
PF: predicated region fallthrough
CT: control target
= control target key end

     0   :  { %10 = vsyncpa [#allocation5], 0  ;;  %s721_s0 = inlined_call_operand.hbm [shape: f32[48,128], index: 0, kind: input, shape index: {}]   ;;  %s722_s1 = inlined_call_operand.vmem [shape: f32[1,128], index: 1, kind: input, shape index: {}]   ;;  %s723_s2 = inlined_call_operand.vmem [shape: f32[1,128], index: 2, kind: input, shape index: {}]   ;;  %s724_s3 = inlined_call_operand.hbm [shape: f32[1,128], index: 3, kind: output, shape index: {0}]   ;;  %s725_s4 = inlined_call_operand.hbm [shape: f32[1,128], index: 4, kind: output, shape index: {1}]  }
   0x1   :  { %12 = vsyncpa [#allocation5 + $0x1], 0 }
   0x2   :  { %13 = vsyncpa [#allocation6], 0 }
   0x3   :  { %14 = vsyncpa [#allocation9], 0  ;;  %s565_s15 = smov 0   ;;  %s567_s16 = smov 0  }
   0x4   :  { %s569_s17 = smov 0   ;;  %s571_s18 = smov 0  }
   0x5 LB: > { %s584_s19 = sadd.s32 4294967295, %s532_s18   ;;  %s587_s20 = sadd.s32 1, %s532_s18   ;;  %s532_s18 = sphi %s571_s18, %s732_s18   ;;  %s528_s17 = sphi %s569_s17, %s731_s17   ;;  %s524_s16 = sphi %s567_s16, %s730_s16   ;;  %s520_s15 = sphi %s565_s15, %s729_s15  }
   0x6   : > { %s24_s21 = ssub.s32 %s532_s18, %s587_s20  ;;  %s27_s22 = sadd.s32 1, %s528_s17 }
   0x7   : > { %p25_p0 = scmp.eq.s32.totalorder %s24_s21, 0  ;;  %p34_p1 = scmp.ne.s32.totalorder %s528_s17, %s524_s16 }
   0x8   : > { %p35_p2 = scmp.eq.s32.totalorder %s532_s18, 0  ;;  %p40_p3 = scmp.ne.s32.totalorder %s524_s16, %s520_s15 }
   0x9   : > { %s597_s23 = scalar_select %p25_p0, %s528_s17, %s27_s22  }
   0xa   : > { %p36_p4 = por %p35_p2, %p34_p1  ;;  %p41_p5 = scmp.eq.s32.totalorder %s584_s19, 0 }
   0xb   : > { %p364_p6 = scmp.lt.s32.totalorder %s532_s18, 3  ;;  %s154_s25 = sand.u32 1, %s528_s17  }
   0xc   : > { %p601_p7 = por %p41_p5, %p40_p3  ;;  %s336_s26 = sshll.u32 %s154_s25, 4 }
   0xd   : > { %s349_s27 = sshll.u32 %s532_s18, 8  ;;  %s158_s5 = scalar_lea.vmem [#allocation4], %s336_s26 }
   0xe   : > { %s610_s30 = scalar_lea.hbm %s721_s0, %s349_s27  ;;  %s165_s6 = sshll.u32 %s158_s5, 4  ;;  %s612_s6 = int_to_ptr.vmem [resolvable:$true] %s165_s6 }
   0xf   : > { %p614_p8 = pnand %p364_p6, %p36_p4  ;;  %s619_s8 = scalar_lea.sflag [#allocation5], %s154_s25 }
  0x10   : > { %s408_s9 = scalar_lea.hbm %s610_s30, 256  ;;  %s413_s12 = scalar_lea.hbm %s721_s0, 768 }
  0x11   : > { %p409_p10 = scmp.ne.s32.totalorder %s610_s30, %s408_s9  ;;  %p410_p11 = pneg %p614_p8 }
  0x12   : > { %p414_p0 = scmp.lt.u32.totalorder %s610_s30, %s721_s0  ;;  %p415_p1 = scmp.lt.u32.totalorder %s413_s12, %s408_s9 }
  0x13   : > { %p411_p12 = pnand %p410_p11, %p409_p10  ;;  %p417_p3 = scmp.lt.u32.totalorder %s408_s9, %s610_s30 }
  0x14   : > { %p416_p2 = por %p415_p1, %p414_p0 }
  0x15   : > { %p412_p13 = pneg %p411_p12 }
  0x16   : > { %p418_p4 = por %p417_p3, %p416_p2 }
  0x18   : > { %p419_p5 = pnand %p418_p4, %p412_p13 }
  0x1a   : > { %422 = shalt.err (!%p419_p5)
}
  0x1b   : > { %s423_s15 = scalar_lea.vmem %s612_s6, 256  ;;  %s534_s21 = smov [#allocation4]  }
  0x1c   : > { %p424_p6 = scmp.ne.s32.totalorder %s612_s6, %s423_s15  ;;  %s428_s22 = sshll.u32 %s534_s21, 4  ;;  %s429_s22 = int_to_ptr.vmem [resolvable:$false] %s428_s22 }
  0x1d   : > { %s430_s25 = scalar_lea.vmem %s429_s22, 512  ;;  %p431_p9 = scmp.lt.s32.totalorder %s612_s6, %s429_s22 }
  0x1e   : > { %p426_p10 = pnand %p424_p6, %p410_p11  ;;  %p432_p0 = scmp.lt.s32.totalorder %s430_s25, %s423_s15 }
  0x20   : > { %p427_p12 = pneg %p426_p10  ;;  %p433_p1 = por %p432_p0, %p431_p9 }
  0x22   : > { %p434_p2 = pnand %p433_p1, %p427_p12 }
  0x24   : > { %437 = shalt.err (!%p434_p2)
}
  0x25   : > { %s535_s26 = smov 128   ;;  %s536_s27 = smov 8  }
  0x26   : > { %363 = dma.hbm_to_vmem [thread:$0]  (!%p614_p8), %s610_s30, 256, %s612_s6, %s619_s8, %s535_s26, %s535_s26, %s536_s27  }
  0x27   : > { %p173_p11 = scmp.lt.s32.totalorder %s532_s18, 4  ;;  %p728_p13 = scmp.ge.s32.totalorder %s532_s18, 1 }
  0x29   : > { %p174_p3 = pnand %p728_p13, %p173_p11 }
  0x2a   : > { %s179_s28 = sand.u32 (!%p174_p3), 1, %s524_s16  }
  0x2b   : > { %177 = sbr.rel (%p174_p3) target bundleno = 161 (0xa1), region = 32  ;;  %s340_s29 = sshll.u32 (!%p174_p3), %s179_s28, 4 }
  0x2c   : > { %s180_s5 = scalar_lea.sflag (!%p174_p3), [#allocation5], %s179_s28  ;;  %s183_s9 = scalar_lea.vmem (!%p174_p3), [#allocation4], %s340_s29 }
  0x32   : > { %507 = dma.done.wait (%p601_p7), %s180_s5, 256  }
  0x33   : > { %509 = vsyncadd (%p601_p7), %s180_s5, 4294967040  ;;  %p341_p9 = scmp.ne.s32.totalorder %s584_s19, 0 }
  0x34   : > { %v537_v0 = vmov (!%p341_p9), 0.0  }
  0x35   : > { %207 = sbr.rel (%p341_p9) target bundleno = 60 (0x3c), region = 40  ;;  %208 = vst [vmem:[#allocation2] sm:$0x1] (!%p341_p9), %v537_v0  ;;  %209 = vst [vmem:[#allocation3] sm:$0x1] (!%p341_p9), %v537_v0 }
  0x3c PF: > { %v210_v1 = vld [vmem:[%s183_s9] sm:$0xff]  ;;  %v211_v2 = vld [vmem:[%s183_s9 + $0x8] sm:$0xff]  ;;  %p342_p7 = scmp.ne.s32.totalorder %s584_s19, 2 }
  0x3d   : > { %v213_v3 = vadd.f32 %v211_v2, %v210_v1  ;;  %v223_v4 = vmul.f32 %v210_v1, %v210_v1  ;;  %v224_v5 = vmul.f32 %v211_v2, %v211_v2  ;;  %v212_v16 = vld [vmem:[#allocation2] sm:$0x1]  ;;  %v222_v19 = vld [vmem:[#allocation3] sm:$0x1] }
  0x3e   : > { %v245_v31 = vld [vmem:[%s722_s1] sm:$0x1] (!%p342_p7) }
  0x3f   : > { %v214_v6 = vrot.slane %v213_v3, 4  ;;  %v225_v7 = vadd.f32 %v224_v5, %v223_v4  ;;  %v250_v34 = vld [vmem:[%s723_s2] sm:$0x1] (!%p342_p7) }
  0x41   : > { %v215_v8 = vadd.f32 %v214_v6, %v213_v3  ;;  %v226_v9 = vrot.slane %v225_v7, 4 }
  0x43   : > { %v216_v10 = vrot.slane %v215_v8, 2  ;;  %v227_v11 = vadd.f32 %v226_v9, %v225_v7 }
  0x45   : > { %v217_v12 = vadd.f32 %v216_v10, %v215_v8  ;;  %v228_v13 = vrot.slane %v227_v11, 2 }
  0x47   : > { %v218_v14 = vrot.slane %v217_v12, 1  ;;  %v229_v15 = vadd.f32 %v228_v13, %v227_v11 }
  0x49   : > { %v219_v17 = vadd.f32 %v218_v14, %v217_v12  ;;  %v230_v18 = vrot.slane %v229_v15, 1  ;;  %237 = sbr.rel (%p342_p7) target bundleno = 113 (0x71), region = 44 }
  0x4b   : > { %v220_v20 = vadd.f32 %v219_v17, %v212_v16  ;;  %v231_v21 = vadd.f32 %v230_v18, %v229_v15 }
  0x4d   : > { %221 = vst [vmem:[#allocation2] sm:$0x1] %v220_v20  ;;  %v232_v22 = vadd.f32 %v231_v21, %v222_v19 }
  0x4f   : > { %233 = vst [vmem:[#allocation3] sm:$0x1] %v232_v22 }
  0x54   : > { %v238_v23 = vld [vmem:[#allocation2] sm:$0x1] }
  0x55   : > { %v239_v25 = vmul.f32 0.025, %v238_v23 }
  0x56   : > { %v240_v24 = vld [vmem:[#allocation3] sm:$0x1] }
  0x57   : > { %v241_v26 = vmul.f32 0.025, %v240_v24  ;;  %v242_v27 = vmul.f32 %v239_v25, %v239_v25 }
  0x59   : > { %v243_v28 = vsub.f32 %v241_v26, %v242_v27 }
  0x5b   : > { %v244_v29 = vmax.f32 %v243_v28, 0.0 }
  0x5d   : > { %v246_v30 = vadd.f32 1e-05, %v244_v29 }
  0x5f   : > { %406 = vrsqrt.f32 %v246_v30 }
  0x69   : > { %v407_v32 = vpop.eup %406 }
  0x6a   : > { %v248_v33 = vmul.f32 %v407_v32, %v245_v31 }
  0x6c   : > { %249 = vst [vmem:[#allocation7] sm:$0x1] %v248_v33  ;;  %v251_v35 = vmul.f32 %v248_v33, %v239_v25 }
  0x6e   : > { %v252_v36 = vsub.f32 %v250_v34, %v251_v35 }
  0x70   : > { %253 = vst [vmem:[#allocation8] sm:$0x1] %v252_v36 }
  0x71 PF: > { %p365_p8 = scmp.eq.s32.totalorder %s584_s19, 2  ;;  %s538_s7 = smov [#allocation7]  }
  0x72   : > { %s261_s8 = sshll.u32 %s538_s7, 4  ;;  %s539_s10 = smov [#allocation8]   ;;  %s262_s8 = int_to_ptr.vmem [resolvable:$true] %s261_s8 }
  0x73   : > { %s272_s11 = sshll.u32 %s539_s10, 4  ;;  %s438_s12 = scalar_lea.vmem %s262_s8, 16  ;;  %s273_s11 = int_to_ptr.vmem [resolvable:$true] %s272_s11 }
  0x74   : > { %p439_p4 = scmp.ne.s32.totalorder %s262_s8, %s438_s12  ;;  %s444_s13 = scalar_lea.vmem %s262_s8, 32 }
  0x75   : > { %p445_p10 = scmp.lt.s32.totalorder %s262_s8, %s262_s8  ;;  %p446_p12 = scmp.lt.s32.totalorder %s444_s13, %s438_s12 }
  0x76   : > { %p440_p5 = pnand %p439_p4, %p365_p8 }
  0x77   : > { %p447_p0 = por %p446_p12, %p445_p10 }
  0x78   : > { %p441_p6 = pneg %p440_p5 }
  0x7a   : > { %p448_p1 = pnand %p447_p0, %p441_p6 }
  0x7c   : > { %451 = shalt.err (!%p448_p1)
}
  0x7d   : > { %s452_s21 = scalar_lea.hbm %s724_s3, 16 }
  0x7e   : > { %p453_p2 = scmp.ne.s32.totalorder %s724_s3, %s452_s21  ;;  %p458_p3 = scmp.lt.u32.totalorder %s452_s21, %s724_s3 }
  0x80   : > { %p454_p11 = pnand %p453_p2, %p365_p8 }
  0x82   : > { %p455_p13 = pneg %p454_p11 }
  0x84   : > { %p460_p9 = pnand %p458_p3, %p455_p13 }
  0x86   : > { %463 = shalt.err (!%p460_p9)
}
  0x87   : > { %353 = dma.vmem_to_hbm [thread:$0]  (%p365_p8), %s262_s8, 16, %s724_s3, [#allocation6]  }
  0x88   : > { %s464_s5 = scalar_lea.vmem %s273_s11, 16  ;;  %s470_s9 = scalar_lea.vmem %s273_s11, 32 }
  0x89   : > { %p465_p7 = scmp.ne.s32.totalorder %s273_s11, %s464_s5  ;;  %p471_p6 = scmp.lt.s32.totalorder %s273_s11, %s273_s11 }
  0x8a   : > { %p472_p10 = scmp.lt.s32.totalorder %s470_s9, %s464_s5 }
  0x8b   : > { %p466_p4 = pnand %p465_p7, %p365_p8 }
  0x8c   : > { %p473_p12 = por %p472_p10, %p471_p6 }
  0x8d   : > { %p467_p5 = pneg %p466_p4 }
  0x8f   : > { %p474_p0 = pnand %p473_p12, %p467_p5 }
  0x91   : > { %477 = shalt.err (!%p474_p0)
}
  0x92   : > { %s478_s30 = scalar_lea.hbm %s725_s4, 16 }
  0x93   : > { %p479_p1 = scmp.ne.s32.totalorder %s725_s4, %s478_s30  ;;  %p484_p13 = scmp.lt.u32.totalorder %s478_s30, %s725_s4 }
  0x95   : > { %p480_p2 = pnand %p479_p1, %p365_p8 }
  0x97   : > { %p481_p11 = pneg %p480_p2 }
  0x99   : > { %p486_p3 = pnand %p484_p13, %p481_p11 }
  0x9b   : > { %489 = shalt.err (!%p486_p3)
}
  0x9c   : > { %355 = dma.vmem_to_hbm [thread:$0]  (%p365_p8), %s273_s11, 16, %s725_s4, [#allocation9]  }
  0x9d   : > { %511 = dma.done.wait (%p365_p8), [#allocation6], 16  }
  0x9e   : > { %513 = vsyncadd (%p365_p8), [#allocation6], 4294967280 }
  0x9f   : > { %515 = dma.done.wait (%p365_p8), [#allocation9], 16  }
  0xa0   : > { %517 = vsyncadd (%p365_p8), [#allocation9], 4294967280 }
  0xa1 PF: > { %p17_p9 = scmp.ge.s32.totalorder %s587_s20, 5   ;;  %s729_s15 = smov %s524_s16 }
  0xa2   : > { %s730_s16 = smov %s528_s17  ;;  %s731_s17 = smov %s597_s23 }
  0xa3   : > { %s732_s18 = smov %s587_s20  ;;  %19 = sbr.rel (!%p17_p9) target bundleno = 5 (0x5), region = 85 }
  0xaa   :  { %289 = vsyncpa [#allocation5], 1 }
  0xab   :  { %291 = vsyncpa [#allocation5 + $0x1], 1 }
  0xac   :  { %292 = vsyncpa [#allocation6], 1 }
  0xad   :  { %294 = vsyncpa [#allocation6 + $0x1], 1 }
  0xae   :  { %295 = vsyncpa [#allocation9], 1 }

</bundles_post_ra>
